<compile_context>
chip_gen: v6e
topology: v6e:2x2x1
jax: 0.10.0
libtpu: 0.0.40
codegen_flags: <defaults>
</compile_context>

<pallas_src>
import functools
import math

import jax
import jax.numpy as jnp
from jax.experimental import pallas as pl
from jax.experimental.pallas import tpu as pltpu

LANES = 128
MIN_PALLAS_BATCH = 64 * 1024          # below this, plain XLA is faster
_LOG_LO = math.log(1e-6)              # log of lower clamp bound
_LOG_HI = math.log1p(-1e-6)           # log of upper clamp bound


@functools.lru_cache(maxsize=1)
def _chip_config():
    """Returns (max_block_rows, vmem_limit_bytes or None, tensorcore_splits)."""
    kind = ""
    try:
        kind = jax.devices()[0].device_kind.lower()
    except Exception:
        pass
    if "v7" in kind or "7x" in kind:
        # 2 TensorCores / chip; only 64 MiB physical VMEM -> cap buffers.
        return 4096, 48 * 1024 * 1024, 2
    if "v6" in kind:
        return 8192, 96 * 1024 * 1024, 1
    if "v5p" in kind or "v4" in kind:
        return 4096, 64 * 1024 * 1024, 2   # megacore parts: 2 TCs
    if "v5" in kind:                       # v5e / v5 lite
        return 4096, 64 * 1024 * 1024, 1
    return 2048, None, 1                   # unknown: stay inside defaults


def _int_pow(base, g):
    if g == 0:
        return jnp.ones_like(base)
    r = base
    for _ in range(g - 1):
        r = r * base
    return r


def _focal_loss_kernel(logits_ref, targets_ref, out_ref, *, alpha, gamma,
                       rows, block_rows, blocks_per_split):
    c = pl.program_id(0)                       # parallel (TensorCore) split
    i = pl.program_id(1)                       # arbitrary reduction axis

    @pl.when(i == 0)
    def _init():
        out_ref[...] = jnp.zeros_like(out_ref)

    x = logits_ref[...].astype(jnp.float32)
    t = targets_ref[...].astype(jnp.float32)

    # Shared stable softplus: only 2 heavy EUP ops (exp, log1p) per element.
    e = jnp.exp(-jnp.abs(x))                   # exp(-|x|) in (0, 1]
    softplus = jnp.log1p(e)                    # log(1 + exp(-|x|))
    log_p = jnp.minimum(x, 0.0) - softplus     # log(sigmoid(x))
    log_1mp = -jnp.maximum(x, 0.0) - softplus  # log(1 - sigmoid(x))
    # clamp(p, 1e-6, 1-1e-6) applied on the (monotone) logs:
    log_p = jnp.clip(log_p, _LOG_LO, _LOG_HI)
    log_1mp = jnp.clip(log_1mp, _LOG_LO, _LOG_HI)

    # p from the same exp: cheap approx reciprocal + 2 Newton steps (VPU only,
    # restores full f32 accuracy so results match the exact reference).
    den = 1.0 + e
    r = pl.reciprocal(den, approx=True)
    r = r * (2.0 - den * r)
    r = r * (2.0 - den * r)
    p = jnp.where(x >= 0.0, r, e * r)
    p = jnp.clip(p, 1e-6, 1.0 - 1e-6)

    if float(gamma).is_integer() and 0 <= int(gamma) <= 8:
        g = int(gamma)                         # default gamma=2: pure VPU muls
        pow_p = _int_pow(p, g)
        pow_1mp = _int_pow(1.0 - p, g)
    else:                                      # reuse logs already computed
        pow_p = jnp.exp(gamma * log_p)
        pow_1mp = jnp.exp(gamma * log_1mp)

    focal_weight = alpha * pow_1mp * t + (1.0 - alpha) * pow_p * (1.0 - t)
    loss = -focal_weight * (t * log_p + (1.0 - t) * log_1mp)

    if block_rows % 8 == 0:
        def fold(v):                           # VALU-only sublane fold
            return jnp.sum(v.reshape(-1, 8, LANES), axis=0)
    else:
        def fold(v):                           # tiny single-block fallback
            return jnp.sum(v, axis=0, keepdims=True)

    logical_block = c * blocks_per_split + i
    remaining = rows - logical_block * block_rows   # valid rows in this block

    @pl.when(remaining >= block_rows)
    def _full_block():                         # common fast path: no masking
        out_ref[...] += fold(loss)[None]

    @pl.when(remaining < block_rows)
    def _partial_block():
        # Partial last block and/or duplicated clamp block (remaining <= 0):
        # mask by remaining-row count (no global flat index -> no overflow).
        row_ids = jax.lax.broadcasted_iota(jnp.int32, loss.shape, 0)
        out_ref[...] += fold(jnp.where(row_ids < remaining, loss, 0.0))[None]


def _focal_sum_jnp(logits, targets, alpha, gamma):
    x = logits.astype(jnp.float32)
    t = targets.astype(jnp.float32)
    p = jnp.clip(jax.nn.sigmoid(x), 1e-6, 1.0 - 1e-6)
    fw = alpha * (1.0 - p) ** gamma * t + (1.0 - alpha) * p ** gamma * (1.0 - t)
    loss = -fw * (t * jnp.log(p) + (1.0 - t) * jnp.log(1.0 - p))
    return jnp.sum(loss)


def _focal_sum_pallas(logits2, targets2, alpha, gamma,
                      block_rows_override=None, splits_override=None):
    rows = logits2.shape[0]
    max_block_rows, vmem_limit, tc_splits = _chip_config()
    if block_rows_override is not None:
        max_block_rows = int(block_rows_override)
    if splits_override is not None:
        tc_splits = int(splits_override)

    block_rows = min(max_block_rows, rows)     # multiple of 8 or full rows
    total_blocks = pl.cdiv(rows, block_rows)
    num_splits = max(1, min(tc_splits, total_blocks))
    blocks_per_split = pl.cdiv(total_blocks, num_splits)
    # Grid must cover every row; duplicated trailing blocks are zero-masked
    # in-kernel via the `remaining` gate.
    assert num_splits * blocks_per_split * block_rows >= rows

    acc_rows = 8 if block_rows % 8 == 0 else 1

    def in_map(c, i):
        # Clamp so a block never indexes past the array; any duplicated block
        # has remaining <= 0 and contributes exactly zero.
        return (jnp.minimum(c * blocks_per_split + i, total_blocks - 1), 0)

    kernel = functools.partial(
        _focal_loss_kernel, alpha=float(alpha), gamma=float(gamma),
        rows=int(rows), block_rows=int(block_rows),
        blocks_per_split=int(blocks_per_split))

    cp_kwargs = dict(dimension_semantics=("parallel", "arbitrary"))
    if vmem_limit is not None:
        cp_kwargs["vmem_limit_bytes"] = int(vmem_limit)
    # TODO(synk): on v7x, verify in a profile that the leading "parallel" axis
    # actually shards across both TensorCores; otherwise switch to
    # pltpu.CORE_PARALLEL / pl.core_map.

    tile = pl.BlockSpec((block_rows, LANES), in_map)
    partials = pl.pallas_call(
        kernel,
        out_shape=jax.ShapeDtypeStruct((num_splits, acc_rows, LANES),
                                       jnp.float32),
        grid_spec=pltpu.PrefetchScalarGridSpec(
            num_scalar_prefetch=0,
            grid=(num_splits, blocks_per_split),
            in_specs=[tile, tile],
            out_specs=pl.BlockSpec((1, acc_rows, LANES),
                                   lambda c, i: (c, 0, 0)),
        ),
        compiler_params=pltpu.CompilerParams(**cp_kwargs),
    )(logits2, targets2)

    return jnp.sum(partials)                   # tiny final reduce in XLA


def focal_loss(logits, targets, alpha=0.25, gamma=2.0, reduction='mean',
               min_pallas_batch=MIN_PALLAS_BATCH,
               block_rows_override=None, splits_override=None):
    logits = jnp.asarray(logits)
    targets = jnp.asarray(targets)
    assert logits.ndim == 1 and targets.shape == logits.shape
    b = logits.shape[0]

    # Keep floating inputs at their native dtype (cast to f32 in-kernel);
    # int/bool labels travel as int8 (1 B/elem) instead of f32.
    if not jnp.issubdtype(logits.dtype, jnp.floating):
        logits = logits.astype(jnp.float32)
    if not jnp.issubdtype(targets.dtype, jnp.floating):
        targets = targets.astype(jnp.int8)

    b_main = (b // LANES) * LANES              # 128-aligned prefix

    if b < min_pallas_batch or b_main == 0:
        # Small-batch bypass: fused XLA elementwise beats kernel launch cost.
        total = _focal_sum_jnp(logits, targets, alpha, gamma)
    else:
        rows = b_main // LANES
        if b_main == b:
            lg2 = logits.reshape(rows, LANES)      # free bitcast, no copy
            tg2 = targets.reshape(rows, LANES)
            tail = jnp.float32(0.0)
        else:
            # Only the aligned prefix goes through the kernel; the <128-elem
            # tail is summed with plain jnp (no full-array pad pass).
            lg2 = logits[:b_main].reshape(rows, LANES)
            tg2 = targets[:b_main].reshape(rows, LANES)
            tail = _focal_sum_jnp(logits[b_main:], targets[b_main:],
                                  alpha, gamma)
        total = _focal_sum_pallas(lg2, tg2, alpha, gamma,
                                  block_rows_override=block_rows_override,
                                  splits_override=splits_override) + tail

    if reduction == 'mean':
        return total / jnp.float32(b)
    return total


def focal_loss_ref(logits, targets, alpha=0.25, gamma=2.0, reduction='mean'):
    probs = jax.nn.sigmoid(jnp.asarray(logits).astype(jnp.float32))
    probs = jnp.clip(probs, 1e-6, 1.0 - 1e-6)
    t = jnp.asarray(targets).astype(jnp.float32)
    fw = alpha * (1.0 - probs) ** gamma * t \
        + (1.0 - alpha) * probs ** gamma * (1.0 - t)
    loss = -fw * (t * jnp.log(probs) + (1.0 - t) * jnp.log(1.0 - probs))
    return loss.mean() if reduction == 'mean' else loss.sum()


if __name__ == "__main__":
    key = jax.random.PRNGKey(0)
    ks = jax.random.split(key, 8)

    def check(out, ref, rtol=1e-5, atol=1e-5):
        assert jnp.allclose(out, ref, rtol=rtol, atol=atol), (out, ref)

    # 1) 128-aligned batch, mean reduction, f32 logits / f32 targets
    #    (single-block kernel path, no slicing, no masking).
    b1 = 1024
    l1 = jax.random.normal(ks[0], (b1,), jnp.float32) * 2.0
    t1 = jax.random.bernoulli(ks[1], 0.5, (b1,)).astype(jnp.float32)
    check(jax.block_until_ready(focal_loss(l1, t1, min_pallas_batch=0)),
          focal_loss_ref(l1, t1), atol=1e-6)

    # 2) Non-128-multiple batch, sum reduction, bf16 logits + bool targets
    #    (aligned-prefix kernel + jnp tail + int8 target path).
    b2 = 300
    l2 = (jax.random.normal(ks[2], (b2,), jnp.float32) * 2.0).astype(jnp.bfloat16)
    t2 = jax.random.bernoulli(ks[3], 0.5, (b2,))
    check(jax.block_until_ready(
              focal_loss(l2, t2, reduction='sum', min_pallas_batch=0)),
          focal_loss_ref(l2, t2, reduction='sum'))

    # 3) Multi-block grid with a partial block and a duplicated (clamped)
    #    block under a forced 2-way split; non-integer gamma / custom alpha.
    b3 = 128 * 37 + 19
    l3 = jax.random.normal(ks[4], (b3,), jnp.float32) * 3.0
    t3 = jax.random.bernoulli(ks[5], 0.3, (b3,)).astype(jnp.float32)
    out3 = jax.block_until_ready(
        focal_loss(l3, t3, alpha=0.5, gamma=1.5, min_pallas_batch=0,
                   block_rows_override=8, splits_override=2))
    check(out3, focal_loss_ref(l3, t3, alpha=0.5, gamma=1.5), atol=1e-6)

    # 4) Tiny batch goes through the pure-XLA bypass (default threshold).
    b4 = 8
    l4 = jax.random.normal(ks[6], (b4,), jnp.float32) * 2.0
    t4 = jax.random.bernoulli(ks[7], 0.5, (b4,)).astype(jnp.float32)
    check(jax.block_until_ready(focal_loss(l4, t4)), focal_loss_ref(l4, t4),
          atol=1e-6)

    print("KERNEL_OK")
</pallas_src>

<mosaic_0001>
module attributes {stable_mosaic.version = 11 : i64} {
  func.func @_focal_loss_kernel(%arg0: i32, %arg1: i32, %arg2: memref<8x128xf32, #tpu.memory_space<vmem>>, %arg3: memref<8x128xf32, #tpu.memory_space<vmem>>, %arg4: memref<1x8x128xf32, #tpu.memory_space<vmem>>) attributes {dimension_semantics = [#tpu.dimension_semantics<parallel>, #tpu.dimension_semantics<arbitrary>], iteration_bounds = array<i64: 1, 1>, scalar_prefetch = 0 : i64, scratch_operands = 0 : i64, tpu.core_type = #tpu.core_type<tc>, window_params = [{transform_indices = @transform_0, window_bounds = array<i64: 8, 128>}, {transform_indices = @transform_1, window_bounds = array<i64: 8, 128>}, {transform_indices = @transform_2, window_bounds = array<i64: 1, 8, 128>}]} {
    %c0_i32 = arith.constant 0 : i32
    %0 = arith.cmpi eq, %arg1, %c0_i32 : i32
    %1 = arith.extui %0 : i1 to i32
    %c0_i32_0 = arith.constant 0 : i32
    %2 = arith.cmpi ne, %1, %c0_i32_0 : i32
    scf.if %2 {
      %cst_28 = arith.constant 0.000000e+00 : f32
      %76 = vector.broadcast %cst_28 : f32 to vector<1x8x128xf32>
      %c0_29 = arith.constant 0 : index
      %c0_30 = arith.constant 0 : index
      %c0_31 = arith.constant 0 : index
      %77 = vector.load %arg4[%c0_29, %c0_30, %c0_31] : memref<1x8x128xf32, #tpu.memory_space<vmem>>, vector<1x8x128xf32>
      tpu.vector_store %arg4[%c0_29, %c0_30, %c0_31], %76 {strides = array<i32>} : memref<1x8x128xf32, #tpu.memory_space<vmem>>, vector<1x8x128xf32>,
    } else {
    }
    %c0 = arith.constant 0 : index
    %c0_1 = arith.constant 0 : index
    %3 = vector.load %arg2[%c0, %c0_1] : memref<8x128xf32, #tpu.memory_space<vmem>>, vector<8x128xf32>
    %c0_2 = arith.constant 0 : index
    %c0_3 = arith.constant 0 : index
    %4 = vector.load %arg3[%c0_2, %c0_3] : memref<8x128xf32, #tpu.memory_space<vmem>>, vector<8x128xf32>
    %5 = math.absf %3 : vector<8x128xf32>
    %cst = arith.constant 0.000000e+00 : f32
    %6 = vector.broadcast %cst : f32 to vector<8x128xf32>
    %7 = arith.subf %6, %5 : vector<8x128xf32>
    %8 = math.exp %7 : vector<8x128xf32>
    %9 = math.log1p %8 : vector<8x128xf32>
    %cst_4 = arith.constant 0.000000e+00 : f32
    %10 = vector.broadcast %cst_4 : f32 to vector<8x128xf32>
    %11 = arith.minimumf %3, %10 : vector<8x128xf32>
    %12 = arith.subf %11, %9 : vector<8x128xf32>
    %cst_5 = arith.constant 0.000000e+00 : f32
    %13 = vector.broadcast %cst_5 : f32 to vector<8x128xf32>
    %14 = arith.maximumf %3, %13 : vector<8x128xf32>
    %cst_6 = arith.constant 0.000000e+00 : f32
    %15 = vector.broadcast %cst_6 : f32 to vector<8x128xf32>
    %16 = arith.subf %15, %14 : vector<8x128xf32>
    %17 = arith.subf %16, %9 : vector<8x128xf32>
    %cst_7 = arith.constant -13.8155107 : f32
    %cst_8 = arith.constant -1.00000045E-6 : f32
    %18 = vector.broadcast %cst_7 : f32 to vector<8x128xf32>
    %19 = arith.maximumf %18, %12 : vector<8x128xf32>
    %20 = vector.broadcast %cst_8 : f32 to vector<8x128xf32>
    %21 = arith.minimumf %20, %19 : vector<8x128xf32>
    %cst_9 = arith.constant -13.8155107 : f32
    %cst_10 = arith.constant -1.00000045E-6 : f32
    %22 = vector.broadcast %cst_9 : f32 to vector<8x128xf32>
    %23 = arith.maximumf %22, %17 : vector<8x128xf32>
    %24 = vector.broadcast %cst_10 : f32 to vector<8x128xf32>
    %25 = arith.minimumf %24, %23 : vector<8x128xf32>
    %cst_11 = arith.constant 1.000000e+00 : f32
    %26 = vector.broadcast %cst_11 : f32 to vector<8x128xf32>
    %27 = arith.addf %26, %8 : vector<8x128xf32>
    %28 = tpu.reciprocal %27 {approx = true} : vector<8x128xf32> -> vector<8x128xf32>
    %29 = arith.mulf %27, %28 : vector<8x128xf32>
    %cst_12 = arith.constant 2.000000e+00 : f32
    %30 = vector.broadcast %cst_12 : f32 to vector<8x128xf32>
    %31 = arith.subf %30, %29 : vector<8x128xf32>
    %32 = arith.mulf %28, %31 : vector<8x128xf32>
    %33 = arith.mulf %27, %32 : vector<8x128xf32>
    %cst_13 = arith.constant 2.000000e+00 : f32
    %34 = vector.broadcast %cst_13 : f32 to vector<8x128xf32>
    %35 = arith.subf %34, %33 : vector<8x128xf32>
    %36 = arith.mulf %32, %35 : vector<8x128xf32>
    %cst_14 = arith.constant 0.000000e+00 : f32
    %37 = vector.broadcast %cst_14 : f32 to vector<8x128xf32>
    %38 = arith.cmpf oge, %3, %37 : vector<8x128xf32>
    %39 = arith.mulf %8, %36 : vector<8x128xf32>
    %40 = arith.select %38, %36, %39 : vector<8x128xi1>, vector<8x128xf32>
    %cst_15 = arith.constant 9.99999997E-7 : f32
    %cst_16 = arith.constant 0.999998986 : f32
    %41 = vector.broadcast %cst_15 : f32 to vector<8x128xf32>
    %42 = arith.maximumf %41, %40 : vector<8x128xf32>
    %43 = vector.broadcast %cst_16 : f32 to vector<8x128xf32>
    %44 = arith.minimumf %43, %42 : vector<8x128xf32>
    %45 = arith.mulf %44, %44 : vector<8x128xf32>
    %cst_17 = arith.constant 1.000000e+00 : f32
    %46 = vector.broadcast %cst_17 : f32 to vector<8x128xf32>
    %47 = arith.subf %46, %44 : vector<8x128xf32>
    %48 = arith.mulf %47, %47 : vector<8x128xf32>
    %cst_18 = arith.constant 2.500000e-01 : f32
    %49 = vector.broadcast %cst_18 : f32 to vector<8x128xf32>
    %50 = arith.mulf %49, %48 : vector<8x128xf32>
    %51 = arith.mulf %50, %4 : vector<8x128xf32>
    %cst_19 = arith.constant 7.500000e-01 : f32
    %52 = vector.broadcast %cst_19 : f32 to vector<8x128xf32>
    %53 = arith.mulf %52, %45 : vector<8x128xf32>
    %cst_20 = arith.constant 1.000000e+00 : f32
    %54 = vector.broadcast %cst_20 : f32 to vector<8x128xf32>
    %55 = arith.subf %54, %4 : vector<8x128xf32>
    %56 = arith.mulf %53, %55 : vector<8x128xf32>
    %57 = arith.addf %51, %56 : vector<8x128xf32>
    %cst_21 = arith.constant 0.000000e+00 : f32
    %58 = vector.broadcast %cst_21 : f32 to vector<8x128xf32>
    %59 = arith.subf %58, %57 : vector<8x128xf32>
    %60 = arith.mulf %4, %21 : vector<8x128xf32>
    %cst_22 = arith.constant 1.000000e+00 : f32
    %61 = vector.broadcast %cst_22 : f32 to vector<8x128xf32>
    %62 = arith.subf %61, %4 : vector<8x128xf32>
    %63 = arith.mulf %62, %25 : vector<8x128xf32>
    %64 = arith.addf %60, %63 : vector<8x128xf32>
    %65 = arith.mulf %59, %64 : vector<8x128xf32>
    %c1_i32 = arith.constant 1 : i32
    %66 = arith.muli %arg0, %c1_i32 : i32
    %67 = arith.addi %66, %arg1 : i32
    %c8_i32 = arith.constant 8 : i32
    %68 = arith.muli %67, %c8_i32 : i32
    %c8_i32_23 = arith.constant 8 : i32
    %69 = arith.subi %c8_i32_23, %68 : i32
    %c8_i32_24 = arith.constant 8 : i32
    %70 = arith.cmpi sge, %69, %c8_i32_24 : i32
    %71 = arith.extui %70 : i1 to i32
    %c0_i32_25 = arith.constant 0 : i32
    %72 = arith.cmpi ne, %71, %c0_i32_25 : i32
    scf.if %72 {
      %c0_28 = arith.constant 0 : index
      %c0_29 = arith.constant 0 : index
      %c0_30 = arith.constant 0 : index
      %76 = vector.load %arg4[%c0_28, %c0_29, %c0_30] : memref<1x8x128xf32, #tpu.memory_space<vmem>>, vector<1x8x128xf32>
      %77 = vector.shape_cast %65 : vector<8x128xf32> to vector<1x8x128xf32>
      %cst_31 = arith.constant dense<0.000000e+00> : vector<8x128xf32>
      %78 = vector.multi_reduction <add>, %77, %cst_31 [0] : vector<1x8x128xf32> to vector<8x128xf32>
      %79 = vector.shape_cast %78 : vector<8x128xf32> to vector<1x8x128xf32>
      %80 = arith.addf %76, %79 : vector<1x8x128xf32>
      %c0_32 = arith.constant 0 : index
      %c0_33 = arith.constant 0 : index
      %c0_34 = arith.constant 0 : index
      %81 = vector.load %arg4[%c0_32, %c0_33, %c0_34] : memref<1x8x128xf32, #tpu.memory_space<vmem>>, vector<1x8x128xf32>
      tpu.vector_store %arg4[%c0_32, %c0_33, %c0_34], %80 {strides = array<i32>} : memref<1x8x128xf32, #tpu.memory_space<vmem>>, vector<1x8x128xf32>,
    } else {
    }
    %c8_i32_26 = arith.constant 8 : i32
    %73 = arith.cmpi slt, %69, %c8_i32_26 : i32
    %74 = arith.extui %73 : i1 to i32
    %c0_i32_27 = arith.constant 0 : i32
    %75 = arith.cmpi ne, %74, %c0_i32_27 : i32
    scf.if %75 {
      %76 = tpu.iota {dimensions = array<i32: 0>} : vector<8x128xi32>
      %c0_28 = arith.constant 0 : index
      %c0_29 = arith.constant 0 : index
      %c0_30 = arith.constant 0 : index
      %77 = vector.load %arg4[%c0_28, %c0_29, %c0_30] : memref<1x8x128xf32, #tpu.memory_space<vmem>>, vector<1x8x128xf32>
      %78 = vector.broadcast %69 : i32 to vector<8x128xi32>
      %79 = arith.cmpi slt, %76, %78 : vector<8x128xi32>
      %cst_31 = arith.constant 0.000000e+00 : f32
      %80 = vector.broadcast %cst_31 : f32 to vector<8x128xf32>
      %81 = arith.select %79, %65, %80 : vector<8x128xi1>, vector<8x128xf32>
      %82 = vector.shape_cast %81 : vector<8x128xf32> to vector<1x8x128xf32>
      %cst_32 = arith.constant dense<0.000000e+00> : vector<8x128xf32>
      %83 = vector.multi_reduction <add>, %82, %cst_32 [0] : vector<1x8x128xf32> to vector<8x128xf32>
      %84 = vector.shape_cast %83 : vector<8x128xf32> to vector<1x8x128xf32>
      %85 = arith.addf %77, %84 : vector<1x8x128xf32>
      %c0_33 = arith.constant 0 : index
      %c0_34 = arith.constant 0 : index
      %c0_35 = arith.constant 0 : index
      %86 = vector.load %arg4[%c0_33, %c0_34, %c0_35] : memref<1x8x128xf32, #tpu.memory_space<vmem>>, vector<1x8x128xf32>
      tpu.vector_store %arg4[%c0_33, %c0_34, %c0_35], %85 {strides = array<i32>} : memref<1x8x128xf32, #tpu.memory_space<vmem>>, vector<1x8x128xf32>,
    } else {
    }
    return
  }
  func.func @transform_0(%arg0: i32, %arg1: i32) -> (i32, i32) {
    %c1_i32 = arith.constant 1 : i32
    %0 = arith.muli %arg0, %c1_i32 : i32
    %1 = arith.addi %0, %arg1 : i32
    %c0_i32 = arith.constant 0 : i32
    %2 = arith.minsi %1, %c0_i32 : i32
    %c0_i32_0 = arith.constant 0 : i32
    %c0_i32_1 = arith.constant 0 : i32
    return %2, %c0_i32_0 : i32, i32
  }
  func.func @transform_1(%arg0: i32, %arg1: i32) -> (i32, i32) {
    %c1_i32 = arith.constant 1 : i32
    %0 = arith.muli %arg0, %c1_i32 : i32
    %1 = arith.addi %0, %arg1 : i32
    %c0_i32 = arith.constant 0 : i32
    %2 = arith.minsi %1, %c0_i32 : i32
    %c0_i32_0 = arith.constant 0 : i32
    %c0_i32_1 = arith.constant 0 : i32
    return %2, %c0_i32_0 : i32, i32
  }
  func.func @transform_2(%arg0: i32, %arg1: i32) -> (i32, i32, i32) {
    %c0_i32 = arith.constant 0 : i32
    %c0_i32_0 = arith.constant 0 : i32
    %c0_i32_1 = arith.constant 0 : i32
    return %arg0, %c0_i32, %c0_i32_0 : i32, i32, i32
  }
}

</mosaic_0001>

<bundles_post_ra>
// kernel: tpu_custom_call.1
= control target key start
LH: loop header
LB: loop body
LE: loop exit
PB: predicated region body
PF: predicated region fallthrough
CT: control target
= control target key end

     0   :  { %7 = vsyncpa [#allocation3], 0  ;;  %s255_s0 = inlined_call_operand.hbm [shape: f32[8,128], index: 0, kind: input, shape index: {}]   ;;  %s256_s1 = inlined_call_operand.hbm [shape: f32[8,128], index: 1, kind: input, shape index: {}]   ;;  %s257_s2 = inlined_call_operand.hbm [shape: f32[1,8,128], index: 2, kind: output, shape index: {}]  }
   0x1   :  { %8 = vsyncpa [#allocation6], 0 }
   0x2   :  { %9 = vsyncpa [#allocation4], 0  ;;  %s228_s9 = smov [#allocation2]   ;;  %s229_s11 = smov [#allocation5]  }
   0x3   :  { %s21_s10 = sshll.u32 %s228_s9, 4  ;;  %s36_s12 = sshll.u32 %s229_s11, 4  ;;  %s22_s10 = int_to_ptr.vmem [resolvable:$true] %s21_s10  ;;  %s37_s12 = int_to_ptr.vmem [resolvable:$true] %s36_s12 }
   0x4   :  { %s170_s13 = scalar_lea.vmem %s22_s10, 128  ;;  %p175_p1 = scmp.lt.s32.totalorder %s22_s10, %s22_s10 }
   0x5   :  { %p171_p0 = scmp.ne.s32.totalorder %s22_s10, %s170_s13  ;;  %p176_p2 = scmp.lt.s32.totalorder %s170_s13, %s170_s13 }
   0x7   :  { %p177_p3 = por %p176_p2, %p175_p1 }
   0x9   :  { %p178_p4 = pnand %p177_p3, %p171_p0 }
   0xb   :  { %181 = shalt.err (!%p178_p4)
}
   0xc   :  { %24 = dma.hbm_to_vmem [thread:$0]  %s255_s0, 128, %s22_s10, [#allocation3]  }
   0xd   :  { %s190_s16 = scalar_lea.vmem %s37_s12, 128  ;;  %p195_p6 = scmp.lt.s32.totalorder %s37_s12, %s37_s12 }
   0xe   :  { %p191_p5 = scmp.ne.s32.totalorder %s37_s12, %s190_s16  ;;  %p196_p7 = scmp.lt.s32.totalorder %s190_s16, %s190_s16 }
  0x10   :  { %p197_p8 = por %p196_p7, %p195_p6 }
  0x12   :  { %p198_p9 = pnand %p197_p8, %p191_p5 }
  0x14   :  { %201 = shalt.err (!%p198_p9)
}
  0x15   :  { %39 = dma.hbm_to_vmem [thread:$0]  %s256_s1, 128, %s37_s12, [#allocation6]  }
  0x16   :  { %222 = dma.done.wait [#allocation3], 128  }
  0x17   :  { %223 = vsyncadd [#allocation3], 4294967168 }
  0x18   :  { %224 = dma.done.wait [#allocation6], 128  }
  0x19   :  { %225 = vsyncadd [#allocation6], 4294967168  ;;  %v57_v0 = vld [vmem:[#allocation2] sm:$0xff]  ;;  %v58_v26 = vld [vmem:[#allocation5] sm:$0xff]  ;;  %s230_s0 = smov [#allocation7]  }
  0x1a   :  { %v59_v1 = vand.u32 2147483647, %v57_v0  ;;  %v74_v13 = vmax.f32 %v57_v0, 0.0  ;;  %v72_v18 = vmin.f32 %v57_v0, 0.0  ;;  %vm89_vm1 = vcmp.ge.f32.partialorder %v57_v0, 0.0  ;;  %s138_s1 = sshll.u32 %s230_s0, 4  ;;  %s139_s1 = int_to_ptr.vmem [resolvable:$true] %s138_s1 }
  0x1b   :  { %v100_v32 = vsub.f32 1.0, %v58_v26  ;;  %s202_s19 = scalar_lea.vmem %s139_s1, 128  ;;  %p207_p11 = scmp.lt.s32.totalorder %s139_s1, %s139_s1 }
  0x1c   :  { %v60_v2 = vsub.f32 0.0, %v59_v1  ;;  %v75_v19 = vsub.f32 0.0, %v74_v13  ;;  %p203_p10 = scmp.ne.s32.totalorder %s139_s1, %s202_s19  ;;  %p208_p12 = scmp.lt.s32.totalorder %s202_s19, %s202_s19 }
  0x1e   :  { %v61_v3 = vmul.f32 1.442695, %v60_v2  ;;  %p209_p13 = por %p208_p12, %p207_p11 }
  0x20   :  { %156 = vpow2.f32 %v61_v3  ;;  %p210_p0 = pnand %p209_p13, %p203_p10 }
  0x2d   :  { %v157_v4 = vpop.eup %156 }
  0x2e   :  { %v63_v5 = vadd.f32 1.0, %v157_v4  ;;  %v66_v6 = vmul.f32 -0.5, %v157_v4  ;;  %v69_v11 = vand.u32 2147483647, %v157_v4 }
  0x30   :  { %158 = vrcp.f32 %v63_v5  ;;  %v67_v8 = vadd.f32 1.0, %v66_v6  ;;  %vm70_vm0 = vcmp.lt.f32.partialorder %v69_v11, 0.0004427343 }
  0x31   :  { %160 = vlog2.f32 %v63_v5 }
  0x32   :  { %v68_v15 = vmul.f32 %v157_v4, %v67_v8 }
  0x3d   :  { %v159_v7 = vpop.eup %158 }
  0x3e   :  { %v83_v9 = vmul.f32 %v159_v7, %v63_v5  ;;  %v161_v10 = vpop.eup %160 }
  0x3f   :  { %v65_v14 = vmul.f32 0.6931472, %v161_v10 }
  0x40   :  { %v84_v12 = vsub.f32 2.0, %v83_v9 }
  0x41   :  { %v71_v20 = vsel %vm70_vm0, %v68_v15, %v65_v14 }
  0x42   :  { %v85_v16 = vmul.f32 %v159_v7, %v84_v12  ;;  %v73_v23 = vsub.f32 %v72_v18, %v71_v20  ;;  %v76_v24 = vsub.f32 %v75_v19, %v71_v20 }
  0x44   :  { %v86_v17 = vmul.f32 %v85_v16, %v63_v5  ;;  %v77_v28 = vmax.f32 %v73_v23, -13.815511  ;;  %v79_v29 = vmax.f32 %v76_v24, -13.815511 }
  0x46   :  { %v87_v21 = vsub.f32 2.0, %v86_v17  ;;  %v78_v33 = vmin.f32 %v77_v28, -1.0000005e-06  ;;  %v80_v34 = vmin.f32 %v79_v29, -1.0000005e-06 }
  0x48   :  { %v88_v22 = vmul.f32 %v87_v21, %v85_v16  ;;  %v104_v41 = vmul.f32 %v78_v33, %v58_v26  ;;  %v105_v42 = vmul.f32 %v100_v32, %v80_v34 }
  0x4a   :  { %v90_v25 = vmul.f32 %v157_v4, %v88_v22  ;;  %v106_v45 = vadd.f32 %v105_v42, %v104_v41 }
  0x4c   :  { %v91_v27 = vsel %vm89_vm1, %v88_v22, %v90_v25 }
  0x4d   :  { %v92_v30 = vmax.f32 %v91_v27, 1e-06 }
  0x4f   :  { %v93_v31 = vmin.f32 %v92_v30, 0.999999 }
  0x51   :  { %v94_v35 = vmul.f32 %v93_v31, %v93_v31  ;;  %v95_v36 = vsub.f32 1.0, %v93_v31 }
  0x53   :  { %v96_v37 = vmul.f32 %v95_v36, %v95_v36  ;;  %v99_v38 = vmul.f32 0.75, %v94_v35 }
  0x55   :  { %v97_v39 = vmul.f32 0.25, %v96_v37  ;;  %v101_v40 = vmul.f32 %v100_v32, %v99_v38 }
  0x57   :  { %v98_v43 = vmul.f32 %v97_v39, %v58_v26 }
  0x59   :  { %v102_v44 = vadd.f32 %v101_v40, %v98_v43 }
  0x5b   :  { %v103_v46 = vsub.f32 0.0, %v102_v44 }
  0x5d   :  { %v107_v47 = vmul.f32 %v106_v45, %v103_v46 }
  0x5f   :  { %118 = vst [vmem:[#allocation7] sm:$0xff] %v107_v47 }
  0x60   :  { %213 = shalt.err (!%p210_p0)
}
  0x61   :  { %141 = dma.vmem_to_hbm [thread:$0]  %s139_s1, 128, %s257_s2, [#allocation4]  }
  0x62   :  { %226 = dma.done.wait [#allocation4], 128  }
  0x63   :  { %227 = vsyncadd [#allocation4], 4294967168 }
  0x64   :  { %145 = vsyncpa [#allocation3], 1 }
  0x65   :  { %146 = vsyncpa [#allocation6], 1 }
  0x66   :  { %147 = vsyncpa [#allocation4], 1 }

</bundles_post_ra>
